<compile_context>
chip_gen: v7x
topology: tpu7x:2x2x1
jax: 0.10.0
libtpu: 0.0.40
codegen_flags: <defaults>
</compile_context>

<pallas_src>
import jax
import jax.numpy as jnp
from jax.experimental import pallas as pl
from jax.experimental.pallas import tpu as pltpu


def _round_up(a, m):
    return (a + m - 1) // m * m


def _fc_kernel(feats_ref, w_ref, b_ref, c_ref):
    # feats_ref: [tile_n, Dp], w_ref: [Dp, Kp], b_ref: [1, Kp] -> c_ref: [tile_n, Kp]
    c_ref[...] = (
        jnp.dot(feats_ref[...], w_ref[...], preferred_element_type=jnp.float32)
        + b_ref[...]
    ).astype(c_ref.dtype)


def iclassifier_forward(x, fc_weight, fc_bias, *, tile_n=1024):
    """Pallas implementation of IClassifier.forward.

    x         : [N, ...]   instance features from the backbone (identity here)
    fc_weight : [K, D]     torch nn.Linear weight layout
    fc_bias   : [K]
    returns (feats [N, D], c [N, K])  -- same as the torch module.
    """
    # TODO(synk): feature_extractor is an arbitrary user-supplied backbone (e.g. a CNN)
    # with no generic Pallas equivalent; it is treated as identity over pre-extracted
    # features (the standard DSMIL usage), so only the flatten + fc are in the kernel.
    n = x.shape[0]
    feats = x.reshape(n, -1).astype(jnp.float32)           # feats.view(N, -1)
    d = feats.shape[1]
    k = fc_weight.shape[0]

    # Lane-align the contraction dim (D) and the output dim (K).
    d_pad = _round_up(d, 128)
    k_pad = _round_up(k, 128)

    feats_in = feats
    if d_pad != d:
        feats_in = jnp.pad(feats, ((0, 0), (0, d_pad - d)))

    w = jnp.asarray(fc_weight, jnp.float32).T               # [D, K] host-side transpose
    if d_pad != d or k_pad != k:
        w = jnp.pad(w, ((0, d_pad - d), (0, k_pad - k)))
    b = jnp.pad(jnp.asarray(fc_bias, jnp.float32), (0, k_pad - k)).reshape(1, k_pad)

    # Pick an N tile: full-N for small bags, otherwise an 8-aligned streamed tile
    # capped so 2x double-buffered feats tiles stay well under scoped VMEM.
    feats_budget_bytes = 8 * 1024 * 1024
    tn_cap = max(8, (feats_budget_bytes // (d_pad * 4)) // 8 * 8)
    tn = min(tile_n, tn_cap)
    tn = n if n <= tn else tn
    grid = (pl.cdiv(n, tn),)

    c_padded = pl.pallas_call(
        _fc_kernel,
        out_shape=jax.ShapeDtypeStruct((n, k_pad), jnp.float32),
        grid_spec=pltpu.PrefetchScalarGridSpec(
            num_scalar_prefetch=0,
            grid=grid,
            in_specs=[
                pl.BlockSpec((tn, d_pad), lambda i: (i, 0)),   # feats: streamed / double-buffered
                pl.BlockSpec((d_pad, k_pad), lambda i: (0, 0)),  # weight: VMEM-resident
                pl.BlockSpec((1, k_pad), lambda i: (0, 0)),      # bias:   VMEM-resident
            ],
            out_specs=pl.BlockSpec((tn, k_pad), lambda i: (i, 0)),
        ),
        compiler_params=pltpu.CompilerParams(
            dimension_semantics=("parallel",),
            vmem_limit_bytes=64 * 1024 * 1024,
        ),
    )(feats_in, w, b)

    c = c_padded[:, :k] if k_pad != k else c_padded
    return feats, c


if __name__ == "__main__":
    key = jax.random.PRNGKey(0)
    kx, kw, kb = jax.random.split(key, 3)

    # Small shapes: N=16 instances, backbone feature map [4, 8, 8] -> feature_size=256,
    # output_class=4.
    N, C, H, W = 16, 4, 8, 8
    K = 4
    D = C * H * W

    x = jax.random.normal(kx, (N, C, H, W), dtype=jnp.float32)
    fc_weight = jax.random.normal(kw, (K, D), dtype=jnp.float32) * 0.1   # torch layout [K, D]
    fc_bias = jax.random.normal(kb, (K,), dtype=jnp.float32) * 0.1

    feats, c = iclassifier_forward(x, fc_weight, fc_bias)
    jax.block_until_ready((feats, c))

    # Pure-JAX mirror of the torch forward for verification.
    feats_ref = x.reshape(N, -1)
    c_ref = feats_ref @ fc_weight.T + fc_bias

    assert feats.shape == (N, D) and c.shape == (N, K)
    assert jnp.allclose(feats, feats_ref, rtol=1e-5, atol=1e-5)
    assert jnp.allclose(c, c_ref, rtol=1e-3, atol=1e-3)

    print("KERNEL_OK")
</pallas_src>

<mosaic_0001>
module attributes {stable_mosaic.version = 11 : i64} {
  func.func @_fc_kernel(%arg0: i32, %arg1: memref<16x256xf32, #tpu.memory_space<vmem>>, %arg2: memref<256x128xf32, #tpu.memory_space<vmem>>, %arg3: memref<1x128xf32, #tpu.memory_space<vmem>>, %arg4: memref<16x128xf32, #tpu.memory_space<vmem>>) attributes {dimension_semantics = [#tpu.dimension_semantics<parallel>], iteration_bounds = array<i64: 1>, scalar_prefetch = 0 : i64, scratch_operands = 0 : i64, tpu.core_type = #tpu.core_type<tc>, window_params = [{transform_indices = @transform_0, window_bounds = array<i64: 16, 256>}, {pipeline_mode = #tpu.pipeline_mode<synchronous>, transform_indices = @transform_1, window_bounds = array<i64: 256, 128>}, {pipeline_mode = #tpu.pipeline_mode<synchronous>, transform_indices = @transform_2, window_bounds = array<i64: 1, 128>}, {transform_indices = @transform_3, window_bounds = array<i64: 16, 128>}]} {
    %c0 = arith.constant 0 : index
    %c0_0 = arith.constant 0 : index
    %0 = vector.load %arg1[%c0, %c0_0] : memref<16x256xf32, #tpu.memory_space<vmem>>, vector<16x256xf32>
    %c0_1 = arith.constant 0 : index
    %c0_2 = arith.constant 0 : index
    %1 = vector.load %arg2[%c0_1, %c0_2] : memref<256x128xf32, #tpu.memory_space<vmem>>, vector<256x128xf32>
    %cst = arith.constant dense<0.000000e+00> : vector<16x128xf32>
    %2 = tpu.matmul %0, %1, %cst {dimension_numbers = #tpu.dot_dimension_numbers<[1], [0], [0], [1], [0, 0, 1, 1], [], []>} : vector<16x256xf32>, vector<256x128xf32>, vector<16x128xf32> -> vector<16x128xf32>
    %c0_3 = arith.constant 0 : index
    %c0_4 = arith.constant 0 : index
    %3 = vector.load %arg3[%c0_3, %c0_4] : memref<1x128xf32, #tpu.memory_space<vmem>>, vector<1x128xf32>
    %4 = vector.broadcast %3 : vector<1x128xf32> to vector<16x128xf32>
    %5 = arith.addf %2, %4 : vector<16x128xf32>
    %c0_5 = arith.constant 0 : index
    %c0_6 = arith.constant 0 : index
    %6 = vector.load %arg4[%c0_5, %c0_6] : memref<16x128xf32, #tpu.memory_space<vmem>>, vector<16x128xf32>
    tpu.vector_store %arg4[%c0_5, %c0_6], %5 {strides = array<i32>} : memref<16x128xf32, #tpu.memory_space<vmem>>, vector<16x128xf32>,
    return
  }
  func.func @transform_0(%arg0: i32) -> (i32, i32) {
    %c0_i32 = arith.constant 0 : i32
    %c0_i32_0 = arith.constant 0 : i32
    return %arg0, %c0_i32 : i32, i32
  }
  func.func @transform_1(%arg0: i32) -> (i32, i32) {
    %c0_i32 = arith.constant 0 : i32
    %c0_i32_0 = arith.constant 0 : i32
    %c0_i32_1 = arith.constant 0 : i32
    return %c0_i32, %c0_i32_0 : i32, i32
  }
  func.func @transform_2(%arg0: i32) -> (i32, i32) {
    %c0_i32 = arith.constant 0 : i32
    %c0_i32_0 = arith.constant 0 : i32
    %c0_i32_1 = arith.constant 0 : i32
    return %c0_i32, %c0_i32_0 : i32, i32
  }
  func.func @transform_3(%arg0: i32) -> (i32, i32) {
    %c0_i32 = arith.constant 0 : i32
    %c0_i32_0 = arith.constant 0 : i32
    return %arg0, %c0_i32 : i32, i32
  }
}

</mosaic_0001>

<bundles_post_ra>
// kernel: tpu_custom_call.1
= control target key start
LH: loop header
LB: loop body
LE: loop exit
PB: predicated region body
PF: predicated region fallthrough
CT: control target
= control target key end

     0   :  { %8 = vsyncpa [#allocation3], 0  ;;  %s463_s0 = inlined_call_operand.hbm [shape: f32[16,256], index: 0, kind: input, shape index: {}]   ;;  %s464_s1 = inlined_call_operand.hbm [shape: f32[256,128], index: 1, kind: input, shape index: {}]   ;;  %s465_s2 = inlined_call_operand.hbm [shape: f32[1,128], index: 2, kind: input, shape index: {}]   ;;  %s466_s3 = inlined_call_operand.hbm [shape: f32[16,128], index: 3, kind: output, shape index: {}]  }
   0x1   :  { %9 = vsyncpa [#allocation6], 0 }
   0x2   :  { %10 = vsyncpa [#allocation4], 0  ;;  %s381_s12 = smov [#allocation5]   ;;  %s287_s16 = scalar_lea.hbm %s464_s1, 4096 }
   0x3   :  { %s28_s13 = sshll.u32 %s381_s12, 4  ;;  %p288_p0 = scmp.ne.s32.totalorder %s464_s1, %s287_s16  ;;  %s29_s13 = int_to_ptr.vmem [resolvable:$true] %s28_s13 }
   0x4   :  { %p291_p1 = scmp.lt.u32.totalorder %s287_s16, %s464_s1 }
   0x6   :  { %p293_p2 = pnand %p291_p1, %p288_p0 }
   0x8   :  { %296 = shalt.err (!%p293_p2)
}
   0x9   :  { %s297_s21 = scalar_lea.vmem %s29_s13, 4096  ;;  %p302_p4 = scmp.lt.s32.totalorder %s29_s13, %s29_s13 }
   0xa   :  { %p298_p3 = scmp.ne.s32.totalorder %s29_s13, %s297_s21  ;;  %p303_p5 = scmp.lt.s32.totalorder %s297_s21, %s297_s21 }
   0xc   :  { %p304_p6 = por %p303_p5, %p302_p4 }
   0xe   :  { %p305_p7 = pnand %p304_p6, %p298_p3 }
  0x10   :  { %308 = shalt.err (!%p305_p7)
}
  0x11   :  { %s382_s22 = smov 128   ;;  %s383_s23 = smov 8  }
  0x12   :  { %34 = dma.hbm_to_vmem [thread:$0]  %s464_s1, 4096, %s29_s13, [#allocation6], %s382_s22, %s382_s22, %s383_s23  }
  0x13   :  { %s384_s26 = smov [#allocation2]   ;;  %s309_s30 = scalar_lea.hbm %s463_s0, 512 }
  0x14   :  { %s16_s27 = sshll.u32 %s384_s26, 4  ;;  %p310_p8 = scmp.ne.s32.totalorder %s463_s0, %s309_s30  ;;  %s17_s27 = int_to_ptr.vmem [resolvable:$true] %s16_s27 }
  0x15   :  { %p313_p9 = scmp.lt.u32.totalorder %s309_s30, %s463_s0 }
  0x17   :  { %p315_p10 = pnand %p313_p9, %p310_p8 }
  0x19   :  { %318 = shalt.err (!%p315_p10)
}
  0x1a   :  { %s319_s8 = scalar_lea.vmem %s17_s27, 512  ;;  %p324_p12 = scmp.lt.s32.totalorder %s17_s27, %s17_s27 }
  0x1b   :  { %p320_p11 = scmp.ne.s32.totalorder %s17_s27, %s319_s8  ;;  %p325_p13 = scmp.lt.s32.totalorder %s319_s8, %s319_s8 }
  0x1d   :  { %p326_p0 = por %p325_p13, %p324_p12 }
  0x1f   :  { %p327_p1 = pnand %p326_p0, %p320_p11 }
  0x21   :  { %330 = shalt.err (!%p327_p1)
}
  0x22   :  { %s385_s1 = smov 256   ;;  %s386_s9 = smov 16  }
  0x23   :  { %22 = dma.hbm_to_vmem [thread:$0]  %s463_s0, 512, %s17_s27, [#allocation3], %s385_s1, %s385_s1, %s386_s9  }
  0x24   :  { %s387_s12 = smov [#allocation7]   ;;  %s331_s16 = scalar_lea.hbm %s465_s2, 16 }
  0x25   :  { %s41_s13 = sshll.u32 %s387_s12, 4  ;;  %p332_p2 = scmp.ne.s32.totalorder %s465_s2, %s331_s16  ;;  %s42_s13 = int_to_ptr.vmem [resolvable:$true] %s41_s13 }
  0x26   :  { %p335_p3 = scmp.lt.u32.totalorder %s331_s16, %s465_s2 }
  0x28   :  { %p337_p4 = pnand %p335_p3, %p332_p2 }
  0x2a   :  { %340 = shalt.err (!%p337_p4)
}
  0x2b   :  { %s341_s21 = scalar_lea.vmem %s42_s13, 16  ;;  %s345_s0 = scalar_lea.vmem %s42_s13, 32 }
  0x2c   :  { %p342_p5 = scmp.ne.s32.totalorder %s42_s13, %s341_s21  ;;  %p346_p6 = scmp.lt.s32.totalorder %s42_s13, %s42_s13 }
  0x2d   :  { %p347_p7 = scmp.lt.s32.totalorder %s345_s0, %s341_s21 }
  0x2f   :  { %p348_p8 = por %p347_p7, %p346_p6 }
  0x31   :  { %p349_p9 = pnand %p348_p8, %p342_p5 }
  0x33   :  { %352 = shalt.err (!%p349_p9)
}
  0x34   :  { %44 = dma.hbm_to_vmem [thread:$0]  %s465_s2, 16, %s42_s13, [#allocation6]  }
  0x35   :  { %375 = dma.done.wait [#allocation3], 512  }
  0x36   :  { %376 = vsyncadd [#allocation3], 4294966784 }
  0x37   :  { %377 = dma.done.wait [#allocation6], 4112  }
  0x38   :  { %378 = vsyncadd [#allocation6], 4294963184  ;;  %v74_v0 = vld [vmem:[#allocation5 + $0x80] sm:$0xff]  ;;  %v75_v1 = vld [vmem:[#allocation5 + $0x88] sm:$0xff]  ;;  %s388_s2 = smov [#allocation8]  }
  0x39   :  { %v58_v2 = vld [vmem:[#allocation5] sm:$0xff]  ;;  %v231_v3 = vpack.c.bf16 %v75_v1, %v74_v0  ;;  %v59_v4 = vld [vmem:[#allocation5 + $0x8] sm:$0xff]  ;;  %v76_v5 = vld [vmem:[#allocation5 + $0x90] sm:$0xff]  ;;  %s179_s26 = sshll.u32 %s388_s2, 4  ;;  %s180_s26 = int_to_ptr.vmem [resolvable:$true] %s179_s26 }
  0x3a   :  { %v77_v6 = vld [vmem:[#allocation5 + $0x98] sm:$0xff]  ;;  %v233_v7 = vpack.c.bf16 %v59_v4, %v58_v2  ;;  %v60_v9 = vld [vmem:[#allocation5 + $0x10] sm:$0xff]  ;;  %v78_v11 = vld [vmem:[#allocation5 + $0xa0] sm:$0xff]  ;;  %s353_s27 = scalar_lea.vmem %s180_s26, 256  ;;  %p358_p11 = scmp.lt.s32.totalorder %s180_s26, %s180_s26 }
  0x3b   :  { %v235_v8 = vpack.c.bf16 %v77_v6, %v76_v5  ;;  %v61_v10 = vld [vmem:[#allocation5 + $0x18] sm:$0xff]  ;;  %232 = vmatprep.subr.bf16.mxu0 %v231_v3  ;;  %263 = vmatprep.subr.bf16.mxu1 %v231_v3  ;;  %v79_v12 = vld [vmem:[#allocation5 + $0xa8] sm:$0xff]  ;;  %v62_v15 = vld [vmem:[#allocation5 + $0x20] sm:$0xff]  ;;  %p354_p10 = scmp.ne.s32.totalorder %s180_s26, %s353_s27  ;;  %p359_p12 = scmp.lt.s32.totalorder %s353_s27, %s353_s27 }
  0x3c   :  { %234 = vmatpush3.bf16.msra.mxu0 %v233_v7  ;;  %271 = vmatpush3.bf16.msra.mxu1 %v233_v7  ;;  %v237_v13 = vpack.c.bf16 %v61_v10, %v60_v9  ;;  %v239_v14 = vpack.c.bf16 %v79_v12, %v78_v11  ;;  %v63_v16 = vld [vmem:[#allocation5 + $0x28] sm:$0xff]  ;;  %v80_v17 = vld [vmem:[#allocation5 + $0xb0] sm:$0xff]  ;;  %v81_v18 = vld [vmem:[#allocation5 + $0xb8] sm:$0xff] }
  0x3d   :  { %236 = vmatprep.subr.bf16.mxu0 %v235_v8  ;;  %264 = vmatprep.subr.bf16.mxu1 %v235_v8  ;;  %v241_v19 = vpack.c.bf16 %v63_v16, %v62_v15  ;;  %v243_v20 = vpack.c.bf16 %v81_v18, %v80_v17  ;;  %v64_v21 = vld [vmem:[#allocation5 + $0x30] sm:$0xff]  ;;  %v65_v22 = vld [vmem:[#allocation5 + $0x38] sm:$0xff]  ;;  %v82_v23 = vld [vmem:[#allocation5 + $0xc0] sm:$0xff]  ;;  %p360_p13 = por %p359_p12, %p358_p11 }
  0x3e   :  { %v83_v24 = vld [vmem:[#allocation5 + $0xc8] sm:$0xff]  ;;  %v57_v26 = vld [vmem:[#allocation2 + $0x18] sm:$0xff]  ;;  %v245_v27 = vpack.c.bf16 %v65_v22, %v64_v21  ;;  %v66_v29 = vld [vmem:[#allocation5 + $0x40] sm:$0xff] }
  0x3f   :  { %v55_v25 = vld [vmem:[#allocation2 + $0x8] sm:$0xff]  ;;  %v247_v28 = vpack.c.bf16 %v83_v24, %v82_v23  ;;  %v84_v31 = vld [vmem:[#allocation5 + $0xd0] sm:$0xff]  ;;  %v85_v32 = vld [vmem:[#allocation5 + $0xd8] sm:$0xff]  ;;  %166 = vmatprep.mubr.f32.mxu1 %v57_v26  ;;  %p361_p0 = pnand %p360_p13, %p354_p10 }
  0x40   :  { %238 = vmatpush3.bf16.msra.mxu0 %v237_v13  ;;  %272 = vmatpush3.bf16.msra.mxu1 %v237_v13  ;;  %v67_v30 = vld [vmem:[#allocation5 + $0x48] sm:$0xff]  ;;  %v251_v34 = vpack.c.bf16 %v85_v32, %v84_v31  ;;  %v68_v35 = vld [vmem:[#allocation5 + $0x50] sm:$0xff]  ;;  %v69_v36 = vld [vmem:[#allocation5 + $0x58] sm:$0xff] }
  0x41   :  { %240 = vmatprep.subr.bf16.mxu0 %v239_v14  ;;  %265 = vmatprep.subr.bf16.mxu1 %v239_v14  ;;  %v249_v33 = vpack.c.bf16 %v67_v30, %v66_v29  ;;  %v86_v37 = vld [vmem:[#allocation5 + $0xe0] sm:$0xff]  ;;  %v87_v38 = vld [vmem:[#allocation5 + $0xe8] sm:$0xff]  ;;  %v253_v39 = vpack.c.bf16 %v69_v36, %v68_v35  ;;  %v88_v43 = vld [vmem:[#allocation5 + $0xf0] sm:$0xff] }
  0x42   :  { %161 = vmatprep.mubr.f32.mxu0 %v55_v25  ;;  %v255_v40 = vpack.c.bf16 %v87_v38, %v86_v37  ;;  %v70_v41 = vld [vmem:[#allocation5 + $0x60] sm:$0xff]  ;;  %v71_v42 = vld [vmem:[#allocation5 + $0x68] sm:$0xff]  ;;  %v89_v44 = vld [vmem:[#allocation5 + $0xf8] sm:$0xff] }
  0x43   :  { %v257_v45 = vpack.c.bf16 %v71_v42, %v70_v41  ;;  %v259_v46 = vpack.c.bf16 %v89_v44, %v88_v43  ;;  %v72_v47 = vld [vmem:[#allocation5 + $0x70] sm:$0xff]  ;;  %v73_v48 = vld [vmem:[#allocation5 + $0x78] sm:$0xff]  ;;  %v54_v50 = vld [vmem:[#allocation2] sm:$0xff] }
  0x44   :  { %242 = vmatpush3.bf16.msra.mxu0 %v241_v19  ;;  %273 = vmatpush3.bf16.msra.mxu1 %v241_v19  ;;  %v261_v49 = vpack.c.bf16 %v73_v48, %v72_v47  ;;  %v56_v51 = vld [vmem:[#allocation2 + $0x10] sm:$0xff]  ;;  %v192_v54 = vld [vmem:[#allocation7] ss:$0 sm:$0xff] }
  0x45   :  { %244 = vmatprep.subr.bf16.mxu0 %v243_v20  ;;  %266 = vmatprep.subr.bf16.mxu1 %v243_v20 }
  0x48   :  { %246 = vmatpush3.bf16.msra.mxu0 %v245_v27  ;;  %274 = vmatpush3.bf16.msra.mxu1 %v245_v27 }
  0x49   :  { %248 = vmatprep.subr.bf16.mxu0 %v247_v28  ;;  %267 = vmatprep.subr.bf16.mxu1 %v247_v28 }
  0x4c   :  { %250 = vmatpush3.bf16.msra.mxu0 %v249_v33  ;;  %275 = vmatpush3.bf16.msra.mxu1 %v249_v33 }
  0x4d   :  { %252 = vmatprep.subr.bf16.mxu0 %v251_v34  ;;  %268 = vmatprep.subr.bf16.mxu1 %v251_v34 }
  0x50   :  { %254 = vmatpush3.bf16.msra.mxu0 %v253_v39  ;;  %276 = vmatpush3.bf16.msra.mxu1 %v253_v39 }
  0x51   :  { %256 = vmatprep.subr.bf16.mxu0 %v255_v40  ;;  %269 = vmatprep.subr.bf16.mxu1 %v255_v40 }
  0x54   :  { %258 = vmatpush3.bf16.msra.mxu0 %v257_v45  ;;  %277 = vmatpush3.bf16.msra.mxu1 %v257_v45 }
  0x55   :  { %260 = vmatprep.subr.bf16.mxu0 %v259_v46  ;;  %270 = vmatprep.subr.bf16.mxu1 %v259_v46 }
  0x58   :  { %262 = vmatpush3.bf16.msra.mxu0 %v261_v49  ;;  %278 = vmatpush3.bf16.msra.mxu1 %v261_v49 }
  0x5b   :  { %162 = vmatmul.mubr.f32.vlgmr.msra.gmra.mrb[0].mxu0 %v54_v50  ;;  %167 = vmatmul.mubr.f32.vlgmr.msra.gmra.mrb[0].mxu1 %v56_v51 }
 0x12e   :  { %v225_v52 = vpop.f32.mrb[0].mxu0  ;;  %v228_v53 = vpop.f32.mrb[0].mxu1 }
 0x12f   :  { %v226_v55 = vpop.f32.mrb[1].mxu0  ;;  %v229_v56 = vpop.f32.mrb[1].mxu1 }
 0x130   :  { %v227_v57 = vadd.f32 %v226_v55, %v225_v52  ;;  %v230_v58 = vadd.f32 %v229_v56, %v228_v53 }
 0x132   :  { %v164_v59 = vadd.f32 %v227_v57, %v192_v54  ;;  %v169_v60 = vadd.f32 %v230_v58, %v192_v54 }
 0x134   :  { %172 = vst [vmem:[#allocation8] sm:$0xff] %v164_v59  ;;  %173 = vst [vmem:[#allocation8 + $0x8] sm:$0xff] %v169_v60 }
 0x135   :  { %364 = shalt.err (!%p361_p0)
}
 0x136   :  { %s365_s30 = scalar_lea.hbm %s466_s3, 256 }
 0x137   :  { %p366_p1 = scmp.ne.s32.totalorder %s466_s3, %s365_s30  ;;  %p369_p2 = scmp.lt.u32.totalorder %s365_s30, %s466_s3 }
 0x139   :  { %p371_p3 = pnand %p369_p2, %p366_p1 }
 0x13b   :  { %374 = shalt.err (!%p371_p3)
}
 0x13c   :  { %185 = dma.vmem_to_hbm [thread:$0]  %s180_s26, 256, %s466_s3, [#allocation4], %s382_s22, %s382_s22, %s383_s23  }
 0x13d   :  { %379 = dma.done.wait [#allocation4], 256  }
 0x13e   :  { %380 = vsyncadd [#allocation4], 4294967040 }
 0x13f   :  { %189 = vsyncpa [#allocation3], 1 }
 0x140   :  { %190 = vsyncpa [#allocation6], 1 }
 0x141   :  { %191 = vsyncpa [#allocation4], 1 }

</bundles_post_ra>
